<compile_context>
chip_gen: v7x
topology: tpu7x:2x2x1
jax: 0.10.0
libtpu: 0.0.40
codegen_flags: <defaults>
</compile_context>

<pallas_src>
import itertools
import functools

import jax
import jax.numpy as jnp
from jax.experimental import pallas as pl
from jax.experimental.pallas import tpu as pltpu


# --------------------------------------------------------------------------
# Helpers
# --------------------------------------------------------------------------

def _round_up(x, m):
    return ((x + m - 1) // m) * m


def _layernorm(x, g, b, eps=1e-5):
    """Two-pass LayerNorm in f32 (numerically safe)."""
    mu = jnp.mean(x, axis=-1, keepdims=True)
    xc = x - mu
    var = jnp.mean(xc * xc, axis=-1, keepdims=True)
    return xc * jax.lax.rsqrt(var + eps) * g + b


# --------------------------------------------------------------------------
# Kernel 1: fused input projections
#   query = src + pos
#   value = (src @ Wv + bv) * (1 - key_padding_mask)            (bf16 out)
#   [offsets | attn-logits] = query @ [Woff | Waw] + b          (one matmul)
#   attn = per-head softmax over n_levels*n_points logits, assembled and
#          stored lane-dense in a single store.
# --------------------------------------------------------------------------

def _proj_kernel(*refs, n_heads, group, n_off, apply_mask):
    if apply_mask:
        (s_ref, p_ref, m_ref, vw_ref, vb_ref, oaw_ref, oab_ref,
         val_ref, off_ref, attn_ref) = refs
    else:
        (s_ref, p_ref, vw_ref, vb_ref, oaw_ref, oab_ref,
         val_ref, off_ref, attn_ref) = refs
        m_ref = None

    src = s_ref[...]                     # bf16
    q = src + p_ref[...]                 # bf16

    val = jnp.dot(src, vw_ref[...], preferred_element_type=jnp.float32) + vb_ref[...]
    if apply_mask:
        val = val * (1.0 - m_ref[...])   # key_padding_mask zeroing
    val_ref[...] = val.astype(val_ref.dtype)

    oa = jnp.dot(q, oaw_ref[...], preferred_element_type=jnp.float32) + oab_ref[...]
    off_ref[...] = oa[:, :n_off]

    # Per-head softmax over the (n_levels * n_points) contiguous logits.
    # Reductions are done on per-head slices, but the result is assembled into one
    # array and written with a single lane-dense store.
    parts = []
    for h in range(n_heads):
        lo = n_off + h * group
        chunk = oa[:, lo:lo + group]
        mx = jnp.max(chunk, axis=-1, keepdims=True)
        e = jnp.exp(chunk - mx)
        s = jnp.sum(e, axis=-1, keepdims=True)
        parts.append(e * pl.reciprocal(s, approx=True))
    attn_ref[...] = jnp.concatenate(parts, axis=-1)


def fused_projections(s2, p2, m2, params, n_heads, n_levels, n_points, tm, apply_mask):
    Mp, D = s2.shape
    n_off = n_heads * n_levels * n_points * 2
    n_aw = n_heads * n_levels * n_points
    n_oa = n_off + n_aw

    kernel = functools.partial(_proj_kernel, n_heads=n_heads,
                               group=n_levels * n_points, n_off=n_off,
                               apply_mask=apply_mask)

    in_specs = [pl.BlockSpec((tm, D), lambda i: (i, 0)),         # src tile (bf16)
                pl.BlockSpec((tm, D), lambda i: (i, 0))]         # pos tile (bf16)
    operands = [s2, p2]
    if apply_mask:
        in_specs.append(pl.BlockSpec((tm, 1), lambda i: (i, 0)))  # mask tile
        operands.append(m2)
    in_specs += [
        pl.BlockSpec((D, D), lambda i: (0, 0)),                   # Wv (bf16, resident)
        pl.BlockSpec((1, D), lambda i: (0, 0)),
        pl.BlockSpec((D, n_oa), lambda i: (0, 0)),                # [Woff|Waw] (bf16)
        pl.BlockSpec((1, n_oa), lambda i: (0, 0)),
    ]
    operands += [params["value_w"], params["value_b"], params["oa_w"], params["oa_b"]]

    value, offs, attn = pl.pallas_call(
        kernel,
        out_shape=(jax.ShapeDtypeStruct((Mp, D), jnp.bfloat16),
                   jax.ShapeDtypeStruct((Mp, n_off), jnp.float32),
                   jax.ShapeDtypeStruct((Mp, n_aw), jnp.float32)),
        grid=(Mp // tm,),
        in_specs=in_specs,
        out_specs=[
            pl.BlockSpec((tm, D), lambda i: (i, 0)),
            pl.BlockSpec((tm, n_off), lambda i: (i, 0)),
            pl.BlockSpec((tm, n_aw), lambda i: (i, 0)),
        ],
        compiler_params=pltpu.CompilerParams(dimension_semantics=("parallel",)),
    )(*operands)
    return value, offs, attn


# --------------------------------------------------------------------------
# Kernel 2: deformable multi-scale bilinear sampling + attention reduction
#   The per-batch value slab (Sp, D) stays resident in VMEM across query tiles
#   (constant index_map over the query-tile grid axis).  For each (head, level,
#   point, corner) the bilinear/attention/in-bounds weights are scattered into a
#   tile-local one-hot weight matrix and reduced with an MXU matmul against the
#   level's value slab, so the (q, h, L, P, hd) sampled tensor never hits HBM.
# --------------------------------------------------------------------------

def _deform_sample_kernel(loc_ref, aw_ref, val_ref, out_ref, *,
                          spatial_shapes, level_starts, n_heads, n_points, hd):
    tq = loc_ref.shape[1]
    n_levels = len(spatial_shapes)
    loc = loc_ref[0]        # (tq, nh*L*P*2) f32, normalized [0,1] locations
    aw = aw_ref[0]          # (tq, nh*L*P)   f32, softmaxed attention weights

    head_acc = [jnp.zeros((tq, hd), jnp.float32) for _ in range(n_heads)]

    for lvl, (H, W) in enumerate(spatial_shapes):
        HW = H * W
        start = level_starts[lvl]
        v_lvl = val_ref[0, start:start + HW, :]                 # (HW, D) bf16 slab
        pos_iota = jax.lax.broadcasted_iota(jnp.int32, (tq, HW), 1)

        for h in range(n_heads):
            wmat = jnp.zeros((tq, HW), jnp.float32)
            for pt in range(n_points):
                c = (h * n_levels + lvl) * n_points + pt
                x = loc[:, 2 * c:2 * c + 1] * W - 0.5           # (tq, 1)
                y = loc[:, 2 * c + 1:2 * c + 2] * H - 0.5
                a = aw[:, c:c + 1]
                x0 = jnp.floor(x)
                y0 = jnp.floor(y)
                for dx in (0.0, 1.0):
                    for dy in (0.0, 1.0):
                        xi = x0 + dx
                        yi = y0 + dy
                        # bilinear weight * attention weight, zeroed out of bounds
                        w = (1.0 - jnp.abs(x - xi)) * (1.0 - jnp.abs(y - yi)) * a
                        inb = ((xi >= 0.0) & (xi <= W - 1.0) &
                               (yi >= 0.0) & (yi <= H - 1.0))
                        w = jnp.where(inb, w, 0.0)
                        flat = (jnp.clip(yi, 0.0, H - 1.0).astype(jnp.int32) * W
                                + jnp.clip(xi, 0.0, W - 1.0).astype(jnp.int32))
                        wmat = wmat + jnp.where(pos_iota == flat, w, 0.0)
            head_acc[h] = head_acc[h] + jnp.dot(
                wmat.astype(jnp.bfloat16), v_lvl[:, h * hd:(h + 1) * hd],
                preferred_element_type=jnp.float32)

    out_ref[0] = jnp.concatenate(head_acc, axis=-1).astype(out_ref.dtype)


def deform_sampling(loc, aw, value, spatial_shapes, n_heads, n_points, tq):
    # TODO(synk): for very large levels (HW >> few thousand) a take/DMA-gather based
    # kernel would beat the tile-local one-hot matmul; at typical DETR level sizes
    # the MXU path is fine and keeps everything in VMEM.
    bs, Sp, n_off = loc.shape
    n_aw = aw.shape[-1]
    D = value.shape[-1]
    hd = D // n_heads
    level_starts = [0] + list(itertools.accumulate(
        H * W for (H, W) in spatial_shapes))[:-1]

    kernel = functools.partial(
        _deform_sample_kernel, spatial_shapes=tuple(spatial_shapes),
        level_starts=tuple(level_starts), n_heads=n_heads,
        n_points=n_points, hd=hd)

    out = pl.pallas_call(
        kernel,
        out_shape=jax.ShapeDtypeStruct((bs, Sp, D), jnp.bfloat16),
        grid=(bs, Sp // tq),
        in_specs=[
            pl.BlockSpec((1, tq, n_off), lambda b, q: (b, q, 0)),   # locations tile
            pl.BlockSpec((1, tq, n_aw), lambda b, q: (b, q, 0)),    # attn-weight tile
            pl.BlockSpec((1, Sp, D), lambda b, q: (b, 0, 0)),       # value slab, resident
        ],
        out_specs=pl.BlockSpec((1, tq, D), lambda b, q: (b, q, 0)),
        compiler_params=pltpu.CompilerParams(
            dimension_semantics=("parallel", "arbitrary")),
    )(loc, aw, value)
    return out


# --------------------------------------------------------------------------
# Kernel 3: fused post-attention block (one pallas_call per layer tail)
#   src1 = LayerNorm1(src + attn_out @ Wout + bout)
#   out  = LayerNorm2(src1 + Linear2(ReLU(Linear1(src1))))
#   src1 and the FFN hidden activation never leave the kernel; the hidden
#   activation is ReLU'd and cast to bf16 in-register (no f32 scratch round-trip).
# --------------------------------------------------------------------------

def _post_attn_kernel(a_ref, r_ref, wo_ref, bo_ref, g1_ref, be1_ref,
                      w1_ref, b1_ref, w2_ref, b2_ref, g2_ref, be2_ref, o_ref):
    y = jnp.dot(a_ref[...], wo_ref[...],
                preferred_element_type=jnp.float32) + bo_ref[...]
    x1 = r_ref[...].astype(jnp.float32) + y                 # residual 1 (f32)
    s1 = _layernorm(x1, g1_ref[...], be1_ref[...])          # norm1 (f32)

    h = jnp.dot(s1.astype(jnp.bfloat16), w1_ref[...],
                preferred_element_type=jnp.float32) + b1_ref[...]
    h = jnp.maximum(h, 0.0).astype(jnp.bfloat16)            # ReLU, straight to MXU
    y2 = jnp.dot(h, w2_ref[...],
                 preferred_element_type=jnp.float32) + b2_ref[...]

    out = _layernorm(s1 + y2, g2_ref[...], be2_ref[...])    # residual 2 + norm2
    o_ref[...] = out.astype(o_ref.dtype)


def post_attn_block(a2, r2, p, tm):
    Mp, D = a2.shape
    F = p["lin1_w"].shape[1]
    out = pl.pallas_call(
        _post_attn_kernel,
        out_shape=jax.ShapeDtypeStruct((Mp, D), jnp.bfloat16),
        grid=(Mp // tm,),
        in_specs=[
            pl.BlockSpec((tm, D), lambda i: (i, 0)),        # attn output tile (bf16)
            pl.BlockSpec((tm, D), lambda i: (i, 0)),        # residual tile (bf16)
            pl.BlockSpec((D, D), lambda i: (0, 0)),         # Wout (bf16, resident)
            pl.BlockSpec((1, D), lambda i: (0, 0)),
            pl.BlockSpec((1, D), lambda i: (0, 0)),
            pl.BlockSpec((1, D), lambda i: (0, 0)),
            pl.BlockSpec((D, F), lambda i: (0, 0)),         # W1 (bf16, resident)
            pl.BlockSpec((1, F), lambda i: (0, 0)),
            pl.BlockSpec((F, D), lambda i: (0, 0)),         # W2 (bf16, resident)
            pl.BlockSpec((1, D), lambda i: (0, 0)),
            pl.BlockSpec((1, D), lambda i: (0, 0)),
            pl.BlockSpec((1, D), lambda i: (0, 0)),
        ],
        out_specs=pl.BlockSpec((tm, D), lambda i: (i, 0)),
        compiler_params=pltpu.CompilerParams(dimension_semantics=("parallel",)),
    )(a2, r2, p["out_w"], p["out_b"], p["norm1_g"], p["norm1_b"],
      p["lin1_w"], p["lin1_b"], p["lin2_w"], p["lin2_b"],
      p["norm2_g"], p["norm2_b"])
    return out


# --------------------------------------------------------------------------
# Plain-JAX glue: reference points (small, elementwise)
# --------------------------------------------------------------------------

def get_reference_points(spatial_shapes, valid_ratios):
    """spatial_shapes: list of (H, W) python ints; valid_ratios: (bs, L, 2)."""
    reference_points_list = []
    for lvl, (H_, W_) in enumerate(spatial_shapes):
        ref_y, ref_x = jnp.meshgrid(
            jnp.linspace(0.5, H_ - 0.5, H_, dtype=jnp.float32),
            jnp.linspace(0.5, W_ - 0.5, W_, dtype=jnp.float32),
            indexing="ij",
        )
        ref_y = ref_y.reshape(-1)[None] / (valid_ratios[:, None, lvl, 1] * H_)
        ref_x = ref_x.reshape(-1)[None] / (valid_ratios[:, None, lvl, 0] * W_)
        ref = jnp.stack((ref_x, ref_y), -1)
        reference_points_list.append(ref)
    reference_points = jnp.concatenate(reference_points_list, 1)
    reference_points = reference_points[:, :, None] * valid_ratios[:, None]
    return reference_points  # (bs, S, L, 2)


# --------------------------------------------------------------------------
# Deformable encoder layer + encoder stack
# --------------------------------------------------------------------------

def deformable_encoder_layer(p, src, pos2, mask2, reference_points, spatial_shapes,
                             n_heads, n_points, tm, apply_mask):
    bs, Sp, D = src.shape
    n_levels = len(spatial_shapes)
    Mp = bs * Sp
    s2 = src.reshape(Mp, D)

    # --- fused MSDeformAttn input projections (value / offsets / softmaxed attn) ---
    value2, offs2, attn2 = fused_projections(
        s2, pos2, mask2, p, n_heads, n_levels, n_points, tm, apply_mask)

    # sampling locations (cheap elementwise, plain JAX, f32)
    offs = offs2.reshape(bs, Sp, n_heads, n_levels, n_points, 2)
    offset_normalizer = jnp.array(
        [[W, H] for (H, W) in spatial_shapes], dtype=jnp.float32)   # (L, 2) as (W, H)
    sampling_locations = (
        reference_points[:, :, None, :, None, :]
        + offs / offset_normalizer[None, None, None, :, None, :]
    )
    loc = sampling_locations.reshape(bs, Sp, n_heads * n_levels * n_points * 2)
    aw = attn2.reshape(bs, Sp, n_heads * n_levels * n_points)
    value = value2.reshape(bs, Sp, D)

    # --- Pallas deformable sampling + attention reduction (value slab in VMEM) ---
    attn_out = deform_sampling(loc, aw, value, spatial_shapes, n_heads, n_points, tm)

    # --- fused: out-proj + residual + norm1 + FFN + residual + norm2 ---
    out = post_attn_block(attn_out.reshape(Mp, D), s2, p, tm)
    return out.reshape(bs, Sp, D)


def transformer_encoder_forward(layer_params, src, pos, spatial_shapes,
                                level_start_index, valid_ratios, key_padding_mask,
                                memory_text=None, n_heads=4, n_points=4, tm=128):
    """Mirrors TransformerEncoder.forward with text/fusion layers = None (default).

    tm: token tile (multiple of 8; use 256-512+ and a multiple of 128 at production).
    """
    # TODO(synk): text_enhance_layer / feature_fusion_layer / checkpointing are the
    # module defaults (None / no-op) and are not implemented here.
    bs, S, D = src.shape

    # --- hoisted padding: pad the token dim ONCE, slice ONCE at the end ---
    Sp = _round_up(S, tm)
    pad_s = Sp - S
    src_p = jnp.pad(src, ((0, 0), (0, pad_s), (0, 0))).astype(jnp.bfloat16)
    pos_p = jnp.pad(pos, ((0, 0), (0, pad_s), (0, 0))).astype(jnp.bfloat16)
    Mp = bs * Sp
    pos2 = pos_p.reshape(Mp, D)

    apply_mask = key_padding_mask is not None
    if apply_mask:
        m = jnp.pad(key_padding_mask.astype(jnp.float32),
                    ((0, 0), (0, pad_s)), constant_values=1.0)
        mask2 = m.reshape(Mp, 1)
    else:
        mask2 = None

    output = src_p
    reference_points = None
    if len(layer_params) > 0:
        reference_points = get_reference_points(spatial_shapes, valid_ratios)
        reference_points = jnp.pad(
            reference_points, ((0, 0), (0, pad_s), (0, 0), (0, 0)))

    for p in layer_params:
        output = deformable_encoder_layer(
            p, output, pos2, mask2, reference_points, spatial_shapes,
            n_heads, n_points, tm, apply_mask)

    out = output[:, :S].astype(src.dtype)
    return out, memory_text


# --------------------------------------------------------------------------
# Deterministic parameter init (matmul weights stored as bf16, biases/LN in f32)
# --------------------------------------------------------------------------

def init_layer_params(key, d_model, d_ffn, n_heads, n_levels, n_points):
    ks = jax.random.split(key, 12)

    def lin(kw, kb, fan_in, fan_out):
        w = jax.random.normal(kw, (fan_in, fan_out), jnp.float32) * 0.02
        b = jax.random.normal(kb, (fan_out,), jnp.float32) * 0.02
        return w, b

    off_w, off_b = lin(ks[0], ks[1], d_model, n_heads * n_levels * n_points * 2)
    aw_w, aw_b = lin(ks[2], ks[3], d_model, n_heads * n_levels * n_points)
    value_w, value_b = lin(ks[4], ks[5], d_model, d_model)
    out_w, out_b = lin(ks[6], ks[7], d_model, d_model)
    lin1_w, lin1_b = lin(ks[8], ks[9], d_model, d_ffn)
    lin2_w, lin2_b = lin(ks[10], ks[11], d_ffn, d_model)

    # Concatenate offset + attention-weight projections into one lane-dense matmul.
    oa_w = jnp.concatenate([off_w, aw_w], axis=1)
    oa_b = jnp.concatenate([off_b, aw_b], axis=0)

    row = lambda v: v.reshape(1, -1)
    return dict(
        value_w=value_w.astype(jnp.bfloat16), value_b=row(value_b),
        oa_w=oa_w.astype(jnp.bfloat16), oa_b=row(oa_b),
        out_w=out_w.astype(jnp.bfloat16), out_b=row(out_b),
        norm1_g=row(jnp.ones((d_model,), jnp.float32)),
        norm1_b=row(jnp.zeros((d_model,), jnp.float32)),
        lin1_w=lin1_w.astype(jnp.bfloat16), lin1_b=row(lin1_b),
        lin2_w=lin2_w.astype(jnp.bfloat16), lin2_b=row(lin2_b),
        norm2_g=row(jnp.ones((d_model,), jnp.float32)),
        norm2_b=row(jnp.zeros((d_model,), jnp.float32)),
    )


# --------------------------------------------------------------------------
# Main
# --------------------------------------------------------------------------

if __name__ == "__main__":
    bs = 2
    d_model = 32
    n_heads = 4
    n_points = 4
    d_ffn = 64
    num_layers = 2
    spatial_shapes = [(4, 4), (2, 2)]            # two feature levels
    n_levels = len(spatial_shapes)
    S = sum(H * W for (H, W) in spatial_shapes)  # 20

    key = jax.random.PRNGKey(0)
    k_src, k_pos, *k_layers = jax.random.split(key, 2 + num_layers)

    src = jax.random.normal(k_src, (bs, S, d_model), jnp.float32)
    pos = jax.random.normal(k_pos, (bs, S, d_model), jnp.float32)
    valid_ratios = jnp.ones((bs, n_levels, 2), jnp.float32)
    key_padding_mask = jnp.zeros((bs, S), dtype=bool)
    level_start_index = jnp.array(
        [0] + list(itertools.accumulate(H * W for (H, W) in spatial_shapes))[:-1],
        dtype=jnp.int32,
    )

    layer_params = [
        init_layer_params(k_layers[i], d_model, d_ffn, n_heads, n_levels, n_points)
        for i in range(num_layers)
    ]

    # tm=16 at toy sizes exercises the tiled/padded multi-step grid path;
    # at production sizes (M ~ 26k, D=256, F=2048) use tm=256-512 (multiple of 128).
    fwd = functools.partial(
        transformer_encoder_forward, n_heads=n_heads, n_points=n_points, tm=16)
    output, memory_text = fwd(
        layer_params, src, pos, spatial_shapes, level_start_index,
        valid_ratios, key_padding_mask, memory_text=None,
    )
    output = jax.block_until_ready(output)

    assert output.shape == (bs, S, d_model)
    assert jnp.all(jnp.isfinite(output))
    assert memory_text is None  # no text_enhance / fusion layers (module default)
    print("KERNEL_OK")
</pallas_src>

<mosaic_0001>
module attributes {stable_mosaic.version = 11 : i64} {
  func.func @_proj_kernel(%arg0: i32, %arg1: memref<16x32xbf16, #tpu.memory_space<vmem>>, %arg2: memref<16x32xbf16, #tpu.memory_space<vmem>>, %arg3: memref<16x1xf32, #tpu.memory_space<vmem>>, %arg4: memref<32x32xbf16, #tpu.memory_space<vmem>>, %arg5: memref<1x32xf32, #tpu.memory_space<vmem>>, %arg6: memref<32x96xbf16, #tpu.memory_space<vmem>>, %arg7: memref<1x96xf32, #tpu.memory_space<vmem>>, %arg8: memref<16x32xbf16, #tpu.memory_space<vmem>>, %arg9: memref<16x64xf32, #tpu.memory_space<vmem>>, %arg10: memref<16x32xf32, #tpu.memory_space<vmem>>) attributes {dimension_semantics = [#tpu.dimension_semantics<parallel>], iteration_bounds = array<i64: 4>, scalar_prefetch = 0 : i64, scratch_operands = 0 : i64, tpu.core_type = #tpu.core_type<tc>, window_params = [{transform_indices = @transform_0, window_bounds = array<i64: 16, 32>}, {transform_indices = @transform_1, window_bounds = array<i64: 16, 32>}, {transform_indices = @transform_2, window_bounds = array<i64: 16, 1>}, {pipeline_mode = #tpu.pipeline_mode<synchronous>, transform_indices = @transform_3, window_bounds = array<i64: 32, 32>}, {pipeline_mode = #tpu.pipeline_mode<synchronous>, transform_indices = @transform_4, window_bounds = array<i64: 1, 32>}, {pipeline_mode = #tpu.pipeline_mode<synchronous>, transform_indices = @transform_5, window_bounds = array<i64: 32, 96>}, {pipeline_mode = #tpu.pipeline_mode<synchronous>, transform_indices = @transform_6, window_bounds = array<i64: 1, 96>}, {transform_indices = @transform_7, window_bounds = array<i64: 16, 32>}, {transform_indices = @transform_8, window_bounds = array<i64: 16, 64>}, {transform_indices = @transform_9, window_bounds = array<i64: 16, 32>}]} {
    %c0 = arith.constant 0 : index
    %c0_0 = arith.constant 0 : index
    %0 = vector.load %arg1[%c0, %c0_0] : memref<16x32xbf16, #tpu.memory_space<vmem>>, vector<16x32xbf16>
    %c0_1 = arith.constant 0 : index
    %c0_2 = arith.constant 0 : index
    %1 = vector.load %arg2[%c0_1, %c0_2] : memref<16x32xbf16, #tpu.memory_space<vmem>>, vector<16x32xbf16>
    %2 = arith.addf %0, %1 : vector<16x32xbf16>
    %c0_3 = arith.constant 0 : index
    %c0_4 = arith.constant 0 : index
    %3 = vector.load %arg4[%c0_3, %c0_4] : memref<32x32xbf16, #tpu.memory_space<vmem>>, vector<32x32xbf16>
    %cst = arith.constant dense<0.000000e+00> : vector<16x32xf32>
    %4 = tpu.matmul %0, %3, %cst {dimension_numbers = #tpu.dot_dimension_numbers<[1], [0], [0], [1], [0, 0, 1, 1], [], []>} : vector<16x32xbf16>, vector<32x32xbf16>, vector<16x32xf32> -> vector<16x32xf32>
    %c0_5 = arith.constant 0 : index
    %c0_6 = arith.constant 0 : index
    %5 = vector.load %arg5[%c0_5, %c0_6] : memref<1x32xf32, #tpu.memory_space<vmem>>, vector<1x32xf32>
    %6 = vector.broadcast %5 : vector<1x32xf32> to vector<16x32xf32>
    %7 = arith.addf %4, %6 : vector<16x32xf32>
    %c0_7 = arith.constant 0 : index
    %c0_8 = arith.constant 0 : index
    %8 = vector.load %arg3[%c0_7, %c0_8] : memref<16x1xf32, #tpu.memory_space<vmem>>, vector<16x1xf32>
    %cst_9 = arith.constant 1.000000e+00 : f32
    %9 = vector.broadcast %cst_9 : f32 to vector<16x1xf32>
    %10 = arith.subf %9, %8 : vector<16x1xf32>
    %11 = vector.broadcast %10 : vector<16x1xf32> to vector<16x32xf32>
    %12 = arith.mulf %7, %11 : vector<16x32xf32>
    %13 = arith.truncf %12 : vector<16x32xf32> to vector<16x32xbf16>
    %c0_10 = arith.constant 0 : index
    %c0_11 = arith.constant 0 : index
    %14 = vector.load %arg8[%c0_10, %c0_11] : memref<16x32xbf16, #tpu.memory_space<vmem>>, vector<16x32xbf16>
    tpu.vector_store %arg8[%c0_10, %c0_11], %13 {strides = array<i32>} : memref<16x32xbf16, #tpu.memory_space<vmem>>, vector<16x32xbf16>,
    %c0_12 = arith.constant 0 : index
    %c0_13 = arith.constant 0 : index
    %15 = vector.load %arg6[%c0_12, %c0_13] : memref<32x96xbf16, #tpu.memory_space<vmem>>, vector<32x96xbf16>
    %cst_14 = arith.constant dense<0.000000e+00> : vector<16x96xf32>
    %16 = tpu.matmul %2, %15, %cst_14 {dimension_numbers = #tpu.dot_dimension_numbers<[1], [0], [0], [1], [0, 0, 1, 1], [], []>} : vector<16x32xbf16>, vector<32x96xbf16>, vector<16x96xf32> -> vector<16x96xf32>
    %c0_15 = arith.constant 0 : index
    %c0_16 = arith.constant 0 : index
    %17 = vector.load %arg7[%c0_15, %c0_16] : memref<1x96xf32, #tpu.memory_space<vmem>>, vector<1x96xf32>
    %18 = vector.broadcast %17 : vector<1x96xf32> to vector<16x96xf32>
    %19 = arith.addf %16, %18 : vector<16x96xf32>
    %20 = vector.extract_strided_slice %19 {offsets = [0, 0], sizes = [16, 64], strides = [1, 1]} : vector<16x96xf32> to vector<16x64xf32>
    %c0_17 = arith.constant 0 : index
    %c0_18 = arith.constant 0 : index
    %21 = vector.load %arg9[%c0_17, %c0_18] : memref<16x64xf32, #tpu.memory_space<vmem>>, vector<16x64xf32>
    tpu.vector_store %arg9[%c0_17, %c0_18], %20 {strides = array<i32>} : memref<16x64xf32, #tpu.memory_space<vmem>>, vector<16x64xf32>,
    %22 = vector.extract_strided_slice %19 {offsets = [0, 64], sizes = [16, 8], strides = [1, 1]} : vector<16x96xf32> to vector<16x8xf32>
    %cst_19 = arith.constant dense<0xFF800000> : vector<16xf32>
    %23 = vector.multi_reduction <maximumf>, %22, %cst_19 [1] : vector<16x8xf32> to vector<16xf32>
    %24 = vector.shape_cast %23 : vector<16xf32> to vector<16x1xf32>
    %25 = vector.broadcast %24 : vector<16x1xf32> to vector<16x8xf32>
    %26 = arith.subf %22, %25 : vector<16x8xf32>
    %27 = math.exp %26 : vector<16x8xf32>
    %cst_20 = arith.constant dense<0.000000e+00> : vector<16xf32>
    %28 = vector.multi_reduction <add>, %27, %cst_20 [1] : vector<16x8xf32> to vector<16xf32>
    %29 = vector.shape_cast %28 : vector<16xf32> to vector<16x1xf32>
    %30 = tpu.reciprocal %29 {approx = true} : vector<16x1xf32> -> vector<16x1xf32>
    %31 = vector.broadcast %30 : vector<16x1xf32> to vector<16x8xf32>
    %32 = arith.mulf %27, %31 : vector<16x8xf32>
    %33 = vector.extract_strided_slice %19 {offsets = [0, 72], sizes = [16, 8], strides = [1, 1]} : vector<16x96xf32> to vector<16x8xf32>
    %cst_21 = arith.constant dense<0xFF800000> : vector<16xf32>
    %34 = vector.multi_reduction <maximumf>, %33, %cst_21 [1] : vector<16x8xf32> to vector<16xf32>
    %35 = vector.shape_cast %34 : vector<16xf32> to vector<16x1xf32>
    %36 = vector.broadcast %35 : vector<16x1xf32> to vector<16x8xf32>
    %37 = arith.subf %33, %36 : vector<16x8xf32>
    %38 = math.exp %37 : vector<16x8xf32>
    %cst_22 = arith.constant dense<0.000000e+00> : vector<16xf32>
    %39 = vector.multi_reduction <add>, %38, %cst_22 [1] : vector<16x8xf32> to vector<16xf32>
    %40 = vector.shape_cast %39 : vector<16xf32> to vector<16x1xf32>
    %41 = tpu.reciprocal %40 {approx = true} : vector<16x1xf32> -> vector<16x1xf32>
    %42 = vector.broadcast %41 : vector<16x1xf32> to vector<16x8xf32>
    %43 = arith.mulf %38, %42 : vector<16x8xf32>
    %44 = vector.extract_strided_slice %19 {offsets = [0, 80], sizes = [16, 8], strides = [1, 1]} : vector<16x96xf32> to vector<16x8xf32>
    %cst_23 = arith.constant dense<0xFF800000> : vector<16xf32>
    %45 = vector.multi_reduction <maximumf>, %44, %cst_23 [1] : vector<16x8xf32> to vector<16xf32>
    %46 = vector.shape_cast %45 : vector<16xf32> to vector<16x1xf32>
    %47 = vector.broadcast %46 : vector<16x1xf32> to vector<16x8xf32>
    %48 = arith.subf %44, %47 : vector<16x8xf32>
    %49 = math.exp %48 : vector<16x8xf32>
    %cst_24 = arith.constant dense<0.000000e+00> : vector<16xf32>
    %50 = vector.multi_reduction <add>, %49, %cst_24 [1] : vector<16x8xf32> to vector<16xf32>
    %51 = vector.shape_cast %50 : vector<16xf32> to vector<16x1xf32>
    %52 = tpu.reciprocal %51 {approx = true} : vector<16x1xf32> -> vector<16x1xf32>
    %53 = vector.broadcast %52 : vector<16x1xf32> to vector<16x8xf32>
    %54 = arith.mulf %49, %53 : vector<16x8xf32>
    %55 = vector.extract_strided_slice %19 {offsets = [0, 88], sizes = [16, 8], strides = [1, 1]} : vector<16x96xf32> to vector<16x8xf32>
    %cst_25 = arith.constant dense<0xFF800000> : vector<16xf32>
    %56 = vector.multi_reduction <maximumf>, %55, %cst_25 [1] : vector<16x8xf32> to vector<16xf32>
    %57 = vector.shape_cast %56 : vector<16xf32> to vector<16x1xf32>
    %58 = vector.broadcast %57 : vector<16x1xf32> to vector<16x8xf32>
    %59 = arith.subf %55, %58 : vector<16x8xf32>
    %60 = math.exp %59 : vector<16x8xf32>
    %cst_26 = arith.constant dense<0.000000e+00> : vector<16xf32>
    %61 = vector.multi_reduction <add>, %60, %cst_26 [1] : vector<16x8xf32> to vector<16xf32>
    %62 = vector.shape_cast %61 : vector<16xf32> to vector<16x1xf32>
    %63 = tpu.reciprocal %62 {approx = true} : vector<16x1xf32> -> vector<16x1xf32>
    %64 = vector.broadcast %63 : vector<16x1xf32> to vector<16x8xf32>
    %65 = arith.mulf %60, %64 : vector<16x8xf32>
    %66 = tpu.concatenate %32, %43, %54, %65 in 1 : vector<16x8xf32>, vector<16x8xf32>, vector<16x8xf32>, vector<16x8xf32> -> vector<16x32xf32>
    %c0_27 = arith.constant 0 : index
    %c0_28 = arith.constant 0 : index
    %67 = vector.load %arg10[%c0_27, %c0_28] : memref<16x32xf32, #tpu.memory_space<vmem>>, vector<16x32xf32>
    tpu.vector_store %arg10[%c0_27, %c0_28], %66 {strides = array<i32>} : memref<16x32xf32, #tpu.memory_space<vmem>>, vector<16x32xf32>,
    return
  }
  func.func @transform_0(%arg0: i32) -> (i32, i32) {
    %c0_i32 = arith.constant 0 : i32
    %c0_i32_0 = arith.constant 0 : i32
    return %arg0, %c0_i32 : i32, i32
  }
  func.func @transform_1(%arg0: i32) -> (i32, i32) {
    %c0_i32 = arith.constant 0 : i32
    %c0_i32_0 = arith.constant 0 : i32
    return %arg0, %c0_i32 : i32, i32
  }
  func.func @transform_2(%arg0: i32) -> (i32, i32) {
    %c0_i32 = arith.constant 0 : i32
    %c0_i32_0 = arith.constant 0 : i32
    return %arg0, %c0_i32 : i32, i32
  }
  func.func @transform_3(%arg0: i32) -> (i32, i32) {
    %c0_i32 = arith.constant 0 : i32
    %c0_i32_0 = arith.constant 0 : i32
    %c0_i32_1 = arith.constant 0 : i32
    return %c0_i32, %c0_i32_0 : i32, i32
  }
  func.func @transform_4(%arg0: i32) -> (i32, i32) {
    %c0_i32 = arith.constant 0 : i32
    %c0_i32_0 = arith.constant 0 : i32
    %c0_i32_1 = arith.constant 0 : i32
    return %c0_i32, %c0_i32_0 : i32, i32
  }
  func.func @transform_5(%arg0: i32) -> (i32, i32) {
    %c0_i32 = arith.constant 0 : i32
    %c0_i32_0 = arith.constant 0 : i32
    %c0_i32_1 = arith.constant 0 : i32
    return %c0_i32, %c0_i32_0 : i32, i32
  }
  func.func @transform_6(%arg0: i32) -> (i32, i32) {
    %c0_i32 = arith.constant 0 : i32
    %c0_i32_0 = arith.constant 0 : i32
    %c0_i32_1 = arith.constant 0 : i32
    return %c0_i32, %c0_i32_0 : i32, i32
  }
  func.func @transform_7(%arg0: i32) -> (i32, i32) {
    %c0_i32 = arith.constant 0 : i32
    %c0_i32_0 = arith.constant 0 : i32
    return %arg0, %c0_i32 : i32, i32
  }
  func.func @transform_8(%arg0: i32) -> (i32, i32) {
    %c0_i32 = arith.constant 0 : i32
    %c0_i32_0 = arith.constant 0 : i32
    return %arg0, %c0_i32 : i32, i32
  }
  func.func @transform_9(%arg0: i32) -> (i32, i32) {
    %c0_i32 = arith.constant 0 : i32
    %c0_i32_0 = arith.constant 0 : i32
    return %arg0, %c0_i32 : i32, i32
  }
}

</mosaic_0001>

<bundles_post_ra>
// kernel: tpu_custom_call.1
= control target key start
LH: loop header
LB: loop body
LE: loop exit
PB: predicated region body
PF: predicated region fallthrough
CT: control target
= control target key end

     0   :  { %15 = vsyncpa [#allocation3], 0  ;;  %s1420_s0 = inlined_call_operand.vmem [shape: bf16[64,32], index: 0, kind: input, shape index: {}]   ;;  %s1421_s1 = inlined_call_operand.vmem [shape: bf16[64,32], index: 1, kind: input, shape index: {}]   ;;  %s1422_s2 = inlined_call_operand.vmem [shape: f32[64,1], index: 2, kind: input, shape index: {}]   ;;  %s1423_s3 = inlined_call_operand.vmem [shape: bf16[32,32], index: 3, kind: input, shape index: {}]   ;;  %s1424_s4 = inlined_call_operand.vmem [shape: f32[1,32], index: 4, kind: input, shape index: {}]   ;;  %s1425_s5 = inlined_call_operand.vmem [shape: bf16[32,96], index: 5, kind: input, shape index: {}]   ;;  %s1426_s6 = inlined_call_operand.vmem [shape: f32[1,96], index: 6, kind: input, shape index: {}]   ;;  %s1427_s7 = inlined_call_operand.vmem [shape: bf16[64,32], index: 7, kind: output, shape index: {0}]   ;;  %s1428_s8 = inlined_call_operand.hbm [shape: f32[64,64], index: 8, kind: output, shape index: {1}]   ;;  %s1429_s9 = inlined_call_operand.vmem [shape: f32[64,32], index: 9, kind: output, shape index: {2}]  }
   0x1   :  { %17 = vsyncpa [#allocation3 + $0x1], 0  ;;  %s1190_s30 = smov 0   ;;  %s1192_s10 = smov 0  }
   0x2   :  { %s1194_s11 = smov 0   ;;  %s1196_s12 = smov 0  }
   0x3 LB: > { %s1211_s13 = sadd.s32 4294967295, %s1128_s12   ;;  %s922_s14 = sadd.s32 4294967294, %s1128_s12   ;;  %s1128_s12 = sphi %s1196_s12, %s1440_s12   ;;  %s1124_s11 = sphi %s1194_s11, %s1439_s11   ;;  %s1120_s10 = sphi %s1192_s10, %s1438_s10   ;;  %s1116_s30 = sphi %s1190_s30, %s1437_s30  }
   0x4   : > { %s1215_s15 = sadd.s32 1, %s1128_s12   ;;  %s218_s16 = sadd.s32 1, %s1124_s11 }
   0x5   : > { %s215_s17 = ssub.s32 %s1128_s12, %s1215_s15  ;;  %p228_p0 = scmp.ne.s32.totalorder %s1124_s11, %s1120_s10 }
   0x6   : > { %p216_p1 = scmp.eq.s32.totalorder %s215_s17, 0  ;;  %p229_p2 = scmp.eq.s32.totalorder %s1211_s13, 3 }
   0x7   : > { %p234_p3 = scmp.ne.s32.totalorder %s1120_s10, %s1116_s30  ;;  %p235_p4 = scmp.eq.s32.totalorder %s922_s14, 3 }
   0x8   : > { %s1226_s18 = scalar_select %p216_p1, %s1124_s11, %s218_s16  }
   0x9   : > { %p1228_p5 = por %p229_p2, %p228_p0  ;;  %p1232_p6 = por %p235_p4, %p234_p3 }
   0xa   : > { %p925_p7 = scmp.ge.s32.totalorder %s1128_s12, 1  ;;  %p318_p8 = scmp.lt.s32.totalorder %s1128_s12, 5 }
   0xc   : > { %p319_p9 = pnand %p925_p7, %p318_p8 }
   0xd   : > { %v1029_v0 = vld [vmem:[%s1425_s5] sm:$0xff] (!%p319_p9)   ;;  %v1130_v1 = vmov (!%p319_p9), 0.0   ;;  %v1030_v2 = vld [vmem:[%s1425_s5 + $0x8] sm:$0xff] (!%p319_p9)   ;;  %vm1131_vm0 = vmmov (!%p319_p9), 0   ;;  %s927_s25 = sshll.u32 (!%p319_p9), %s1211_s13, 1  ;;  %vm440_vm1 = vcmask (!%p319_p9), 261120  }
   0xe   : > { %322 = sbr.rel (%p319_p9) target bundleno = 832 (0x340), region = 48  ;;  %971 = vmatprep.subr.bf16.mxu1 (!%p319_p9), %v1130_v1  ;;  %963 = vmatprep.subr.bf16.mxu0 (!%p319_p9), %v1130_v1  ;;  %p375_p10 = scmp.lt.s32.totalorder (!%p319_p9), %s927_s25, 7  ;;  %v944_v10 = vld [vmem:[%s1426_s6] ss:$0 sm:$0xff] (!%p319_p9)  ;;  %vm587_vm2 = vcmask (!%p319_p9), 589312   ;;  %vm584_vm3 = vcmask (!%p319_p9), 523264  }
   0xf   : > { %972 = vmatpush3.bf16.msra.mxu1 (!%p319_p9), %v1029_v0  ;;  %975 = vmatprep.mubr.msk.bf16.mxu1 (!%p319_p9), %vm1131_vm0, %v1130_v1  ;;  %s364_s21 = sand.u32 (!%p319_p9), 1, %s1120_s10   ;;  %vm619_vm4 = vcmask (!%p319_p9), 654912   ;;  %vm650_vm5 = vcmask (!%p319_p9), 720512   ;;  %vm681_vm6 = vcmask (!%p319_p9), 786112   ;;  %s1431_s28 = smov (!%p319_p9), 64   ;;  %v1031_v53 = vld [vmem:[%s1423_s3] sm:$0xff] (!%p319_p9)  }
  0x10   : > { %973 = vmatprep.subr.bf16.mxu1 (!%p319_p9), %v1130_v1  ;;  %967 = vmatprep.mubr.msk.bf16.mxu0 (!%p319_p9), %vm1131_vm0, %v1130_v1  ;;  %s926_s22 = sshll.u32 (!%p319_p9), %s364_s21, 4  ;;  %s1134_s14 = smov (!%p319_p9), 48   ;;  %v1135_v54 = vmov (!%p319_p9), 0   ;;  %v1032_v56 = vld [vmem:[%s1423_s3 + $0x8] sm:$0xff] (!%p319_p9)   ;;  %vm608_vm7 = vcmask (!%p319_p9), 64512   ;;  %vm509_vm8 = vcmask (!%p319_p9), 257024  }
  0x11   : > { %s1276_s27 = scalar_lea.vmem (!%p319_p9), [#allocation2], %s926_s22  ;;  %1027 = vset.pattern.permute.xlu0 (!%p319_p9), %v1135_v54  ;;  %1028 = vset.pattern.permute.xlu1 (!%p319_p9), %v1135_v54  ;;  %s1136_s24 = smov (!%p319_p9), 40  }
  0x12   : > { %964 = vmatpush3.bf16.msra.mxu0 (!%p319_p9), %v1031_v53 }
  0x13   : > { %974 = vmatpush3.bf16.msra.mxu1 (!%p319_p9), %v1030_v2  ;;  %965 = vmatprep.subr.bf16.mxu0 (!%p319_p9), %v1130_v1 }
  0x15   : > { %s1442_s25 = smov (!%p375_p10, %s927_s25), 7 }
  0x16   : > { %s1253_s26 = sshll.u32 %s1442_s25, 2  ;;  %966 = vmatpush3.bf16.msra.mxu0 %v1032_v56 }
  0x17   : > { %s378_s29 = scalar_lea.vmem %s1420_s0, %s1253_s26  ;;  %s384_s17 = scalar_lea.vmem %s1421_s1, %s1253_s26 }
  0x18   : > { %v1263_v3 = vld [vmem:[%s378_s29] sm:$0xf]  ;;  %v1265_v4 = vld [vmem:[%s378_s29 + $0x4] sm:$0xf]  ;;  %s1133_s29 = smov 56   ;;  %s1356_s23 = scalar_lea.vmem %s1427_s7, %s1253_s26 }
  0x19   : > { %v408_v5 = vld [vmem:[%s384_s17] sm:$0xf]  ;;  %v409_v6 = vld [vmem:[%s384_s17 + $0x4] sm:$0xf]  ;;  %v938_v58 = vcombine.low %v1263_v3, %v1265_v4 }
  0x1a   : > { %v410_v7 = vadd.bf16 %v408_v5, %v1263_v3  ;;  %v411_v8 = vadd.bf16 %v409_v6, %v1265_v4 }
  0x1b   : > { %968 = vmatmul.mubr.msk.bf16.vlgmr.msra.gmra.mrb[0].mxu0 %vm440_vm1, %v938_v58 }
  0x1c   : > { %v945_v9 = vcombine.low %v410_v7, %v411_v8 }
  0x1e   : > { %976 = vmatmul.mubr.msk.bf16.vlgmr.msra.gmra.mrb[0].mxu1 %vm440_vm1, %v945_v9 }
  0xf1   : > { %v577_v11 = vpop.f32.mrb[0].mxu1 }
  0xf2   : > { %v578_v12 = vadd.f32 %v944_v10, %v577_v11  ;;  %v977_v13 = vpop.f32.mrb[1].mxu1 }
  0xf3   : > { %v580_v14 = vpop.f32.mrb[2].mxu1 }
  0xf4   : > { %v581_v15 = vadd.f32 %v944_v10, %v580_v14  ;;  %v978_v16 = vpop.f32.mrb[3].mxu1  ;;  %v588_v17 = vsel %vm587_vm2, %v578_v12, -inf  ;;  %585 = vst.msk [vmem:[%s1276_s27] sm:$0xff] %vm584_vm3, %v578_v12  ;;  %v620_v19 = vsel %vm619_vm4, %v578_v12, -inf  ;;  %v651_v21 = vsel %vm650_vm5, %v578_v12, -inf }
  0xf5   : > { %589 = vmax.xlane.f32.xlu0 %v588_v17  ;;  %v682_v23 = vsel %vm681_vm6, %v578_v12, -inf  ;;  %v478_v17 = vpop.f32.mrb[0].mxu0 }
  0xf6   : > { %v591_v18 = vsel %vm587_vm2, %v581_v15, -inf  ;;  %586 = vst.msk [vmem:[%s1276_s27 + $0x8] sm:$0xff] %vm584_vm3, %v581_v15  ;;  %v623_v20 = vsel %vm619_vm4, %v581_v15, -inf  ;;  %v654_v22 = vsel %vm650_vm5, %v581_v15, -inf  ;;  %v685_v24 = vsel %vm681_vm6, %v581_v15, -inf }
  0xf7   : > { %592 = vmax.xlane.f32.xlu1 %v591_v18  ;;  %v969_v18 = vpop.f32.mrb[1].mxu0 }
  0xf9   : > { %621 = vmax.xlane.f32.xlu0 %v620_v19  ;;  %v481_v19 = vpop.f32.mrb[2].mxu0 }
  0xfb   : > { %624 = vmax.xlane.f32.xlu1 %v623_v20  ;;  %v970_v20 = vpop.f32.mrb[3].mxu0 }
  0xfd   : > { %652 = vmax.xlane.f32.xlu0 %v651_v21 }
  0xff   : > { %655 = vmax.xlane.f32.xlu1 %v654_v22 }
 0x101   : > { %683 = vmax.xlane.f32.xlu0 %v682_v23 }
 0x103   : > { %686 = vmax.xlane.f32.xlu1 %v685_v24 }
 0x182   : > { %v590_v25 = vpop.xlane.xlu0 %589 }
 0x183   : > { %v594_v26 = vsub.f32 %v578_v12, %v590_v25 }
 0x184   : > { %v593_v27 = vpop.xlane.xlu1 %592 }
 0x185   : > { %v596_v28 = vmul.f32 1.442695, %v594_v26  ;;  %v595_v29 = vsub.f32 %v581_v15, %v593_v27 }
 0x186   : > { %v622_v30 = vpop.xlane.xlu0 %621 }
 0x187   : > { %1034 = vpow2.f32 %v596_v28  ;;  %v626_v31 = vsub.f32 %v578_v12, %v622_v30  ;;  %v598_v34 = vmul.f32 1.442695, %v595_v29 }
 0x188   : > { %v625_v32 = vpop.xlane.xlu1 %624 }
 0x189   : > { %v628_v33 = vmul.f32 1.442695, %v626_v31  ;;  %v627_v35 = vsub.f32 %v581_v15, %v625_v32  ;;  %v937_v32 = vld [vmem:[%s1424_s4] ss:$0 sm:$0xff] }
 0x18a   : > { %v653_v36 = vpop.xlane.xlu0 %652 }
 0x18b   : > { %1036 = vpow2.f32 %v628_v33  ;;  %v657_v37 = vsub.f32 %v578_v12, %v653_v36  ;;  %v630_v40 = vmul.f32 1.442695, %v627_v35  ;;  %v482_v36 = vadd.f32 %v937_v32, %v481_v19 }
 0x18c   : > { %v656_v38 = vpop.xlane.xlu1 %655  ;;  %1038 = vpow2.f32 %v598_v34 }
 0x18d   : > { %v659_v39 = vmul.f32 1.442695, %v657_v37  ;;  %v658_v42 = vsub.f32 %v581_v15, %v656_v38 }
 0x18e   : > { %v684_v41 = vpop.xlane.xlu0 %683 }
 0x18f   : > { %1040 = vpow2.f32 %v659_v39  ;;  %v688_v43 = vsub.f32 %v578_v12, %v684_v41  ;;  %v661_v47 = vmul.f32 1.442695, %v658_v42 }
 0x190   : > { %v687_v44 = vpop.xlane.xlu1 %686  ;;  %1042 = vpow2.f32 %v630_v40  ;;  %v479_v40 = vadd.f32 %v937_v32, %v478_v17 }
 0x191   : > { %v1280_v45 = vpop.eup %1034  ;;  %v690_v46 = vmul.f32 1.442695, %v688_v43  ;;  %v689_v48 = vsub.f32 %v581_v15, %v687_v44 }
 0x192   : > { %602 = vrot.lane.b32.xlu0 %v1280_v45, %s1431_s28 }
 0x193   : > { %1044 = vpow2.f32 %v690_v46  ;;  %v692_v50 = vmul.f32 1.442695, %v689_v48 }
 0x194   : > { %1046 = vpow2.f32 %v661_v47 }
 0x195   : > { %v1284_v49 = vpop.eup %1036  ;;  %1048 = vpow2.f32 %v692_v50 }
 0x196   : > { %634 = vrot.lane.b32.xlu1 %v1284_v49, %s1133_s29  ;;  %v1287_v51 = vpop.eup %1038 }
 0x199   : > { %v1289_v52 = vpop.eup %1040 }
 0x19a   : > { %665 = vrot.lane.b32.xlu0 %v1289_v52, %s1134_s14  ;;  %604 = vrot.lane.b32.xlu1 %v1287_v51, %s1431_s28  ;;  %v1297_v55 = vpop.eup %1042 }
 0x19d   : > { %v1302_v57 = vpop.eup %1044 }
 0x19e   : > { %696 = vrot.lane.b32.xlu0 %v1302_v57, %s1136_s24  ;;  %636 = vrot.lane.b32.xlu1 %v1297_v55, %s1133_s29  ;;  %v1309_v59 = vpop.eup %1046  ;;  %s1430_s29 = sshll.u32 %s1442_s25, 3 }
 0x19f   : > { %v1313_v60 = vpop.eup %1048  ;;  %s390_s17 = scalar_lea.vmem %s1422_s2, %s1430_s29 }
 0x1a0   : > { %v486_v13 = vld [vmem:[%s390_s17 + $0x8] sm:$0xff]  ;;  %v485_v15 = vld [vmem:[%s390_s17] sm:$0xff]  ;;  %s1137_s17 = smov [#allocation2]  }
 0x1a1   : > { %v488_v14 = vsub.f32 1.0, %v486_v13  ;;  %v487_v16 = vsub.f32 1.0, %v485_v15  ;;  %s1070_s29 = sshll.u32 %s1137_s17, 4  ;;  %s1071_s29 = int_to_ptr.vmem [resolvable:$false] %s1070_s29 }
 0x1a2   : > { %667 = vrot.lane.b32.xlu1 %v1309_v59, %s1134_s14  ;;  %s782_s14 = sshll.u32 %s1276_s27, 4  ;;  %s1349_s14 = int_to_ptr.vmem [resolvable:$true] %s782_s14 }
 0x1a3   : > { %s1066_s16 = scalar_lea.vmem %s1349_s14, 256  ;;  %p1073_p0 = scmp.lt.s32.totalorder %s1349_s14, %s1071_s29 }
 0x1a4   : > { %p1067_p11 = scmp.ne.s32.totalorder %s1349_s14, %s1066_s16 }
 0x1a6   : > { %698 = vrot.lane.b32.xlu1 %v1313_v60, %s1136_s24  ;;  %s956_s24 = sshll.u32 %s1211_s13, 8  ;;  %p1068_p12 = pnand %p1067_p11, %p1228_p5 }
 0x1a7   : > { %s1346_s22 = scalar_lea.hbm %s1428_s8, %s956_s24  ;;  %s1360_s24 = scalar_lea.sflag [#allocation3], %s364_s21 }
 0x1a8   : > { %p1069_p13 = pneg %p1068_p12 }
 0x204   : > { %v603_v61 = vpop.permute.xlu0 %602 }
 0x205   : > { %v609_v62 = vsel %vm608_vm7, %v603_v61, 0.0 }
 0x206   : > { %610 = vadd.xlane.f32.xlu0 %v609_v62 }
 0x208   : > { %v635_v63 = vpop.permute.xlu1 %634 }
 0x209   : > { %v640_v0 = vsel %vm608_vm7, %v635_v63, 0.0 }
 0x20a   : > { %641 = vadd.xlane.f32.xlu1 %v640_v0 }
 0x20c   : > { %v666_v1 = vpop.permute.xlu0 %665  ;;  %v605_v2 = vpop.permute.xlu1 %604 }
 0x20d   : > { %v671_v3 = vsel %vm608_vm7, %v666_v1, 0.0  ;;  %v612_v5 = vsel %vm608_vm7, %v605_v2, 0.0 }
 0x20e   : > { %672 = vadd.xlane.f32.xlu0 %v671_v3 }
 0x210   : > { %v637_v4 = vpop.permute.xlu1 %636  ;;  %v697_v9 = vpop.permute.xlu0 %696 }
 0x211   : > { %v643_v7 = vsel %vm608_vm7, %v637_v4, 0.0  ;;  %v702_v11 = vsel %vm608_vm7, %v697_v9, 0.0 }
 0x212   : > { %613 = vadd.xlane.f32.xlu0 %v612_v5 }
 0x214   : > { %v668_v6 = vpop.permute.xlu1 %667 }
 0x215   : > { %v674_v8 = vsel %vm608_vm7, %v668_v6, 0.0 }
 0x216   : > { %644 = vadd.xlane.f32.xlu0 %v643_v7  ;;  %675 = vadd.xlane.f32.xlu1 %v674_v8 }
 0x218   : > { %v699_v10 = vpop.permute.xlu1 %698 }
 0x219   : > { %v705_v12 = vsel %vm608_vm7, %v699_v10, 0.0 }
 0x21a   : > { %703 = vadd.xlane.f32.xlu0 %v702_v11  ;;  %706 = vadd.xlane.f32.xlu1 %v705_v12 }
 0x22b   : > { %496 = vperm.xlu1 %1028, %v488_v14  }
 0x230   : > { %491 = vperm.xlu0 %1027, %v487_v16  }
 0x293   : > { %v611_v21 = vpop.xlane.xlu0 %610 }
 0x294   : > { %1050 = vrcp.f32 %v611_v21 }
 0x297   : > { %v642_v22 = vpop.xlane.xlu1 %641 }
 0x298   : > { %1052 = vrcp.f32 %v642_v22 }
 0x29b   : > { %v673_v23 = vpop.xlane.xlu0 %672 }
 0x29c   : > { %1054 = vrcp.f32 %v673_v23 }
 0x29e   : > { %v1051_v24 = vpop.eup %1050 }
 0x29f   : > { %v614_v25 = vpop.xlane.xlu0 %613  ;;  %v617_v26 = vmul.f32 %v1051_v24, %v1280_v45 }
 0x2a0   : > { %1056 = vrcp.f32 %v614_v25 }
 0x2a1   : > { %714 = vrot.lane.b32.xlu1 %v617_v26, %s1431_s28 }
 0x2a2   : > { %v1053_v27 = vpop.eup %1052 }
 0x2a3   : > { %v645_v28 = vpop.xlane.xlu0 %644  ;;  %v676_v29 = vpop.xlane.xlu1 %675  ;;  %v648_v30 = vmul.f32 %v1053_v27, %v1284_v49 }
 0x2a4   : > { %1058 = vrcp.f32 %v645_v28 }
 0x2a5   : > { %722 = vrot.lane.b32.xlu1 %v648_v30, %s1431_s28  ;;  %1060 = vrcp.f32 %v676_v29 }
 0x2a6   : > { %v1055_v31 = vpop.eup %1054 }
 0x2a7   : > { %v704_v33 = vpop.xlane.xlu0 %703  ;;  %v707_v34 = vpop.xlane.xlu1 %706  ;;  %v679_v35 = vmul.f32 %v1055_v31, %v1289_v52 }
 0x2a8   : > { %1062 = vrcp.f32 %v707_v34 }
 0x2a9   : > { %730 = vrot.lane.b32.xlu1 %v679_v35, %s1431_s28  ;;  %1064 = vrcp.f32 %v704_v33 }
 0x2aa   : > { %v1057_v37 = vpop.eup %1056 }
 0x2ab   : > { %v618_v38 = vmul.f32 %v1057_v37, %v1287_v51  ;;  %v497_v39 = vpop.permute.xlu1 %496 }
 0x2ac   : > { %v500_v41 = vmul.f32 %v497_v39, %v482_v36 }
 0x2ad   : > { %716 = vrot.lane.b32.xlu1 %v618_v38, %s1431_s28 }
 0x2ae   : > { %v1059_v42 = vpop.eup %1058  ;;  %v955_v47 = vpack.c.bf16 %v500_v41, %v500_v41 }
 0x2af   : > { %v649_v43 = vmul.f32 %v1059_v42, %v1297_v55  ;;  %v492_v44 = vpop.permute.xlu0 %491  ;;  %v1061_v45 = vpop.eup %1060 }
 0x2b0   : > { %v499_v46 = vmul.f32 %v492_v44, %v479_v40 }
 0x2b1   : > { %724 = vrot.lane.b32.xlu1 %v649_v43, %s1431_s28  ;;  %s1072_s28 = scalar_lea.vmem %s1071_s29, 512 }
 0x2b2   : > { %v954_v48 = vpack.c.bf16 %v499_v46, %v499_v46  ;;  %p1074_p1 = scmp.lt.s32.totalorder %s1072_s28, %s1066_s16 }
 0x2b4   : > { %p1075_p2 = por %p1074_p1, %p1073_p0 }
 0x2b6   : > { %p1076_p3 = pnand %p1075_p2, %p1069_p13 }
 0x2b8   : > { %1079 = shalt.err (!%p1076_p3)
}
 0x2b9   : > { %s1080_s26 = scalar_lea.hbm %s1346_s22, 256  ;;  %s1084_s27 = scalar_lea.hbm %s1428_s8, 1024 }
 0x2ba   : > { %p1081_p4 = scmp.ne.s32.totalorder %s1346_s22, %s1080_s26  ;;  %p1085_p9 = scmp.lt.u32.totalorder %s1346_s22, %s1428_s8 }
 0x2bb   : > { %p1086_p10 = scmp.lt.u32.totalorder %s1084_s27, %s1080_s26  ;;  %p1088_p12 = scmp.lt.u32.totalorder %s1080_s26, %s1346_s22 }
 0x2bc   : > { %p1082_p7 = pnand %p1081_p4, %p1228_p5 }
 0x2bd   : > { %p1087_p11 = por %p1086_p10, %p1085_p9 }
 0x2be   : > { %p1083_p8 = pneg %p1082_p7 }
 0x2bf   : > { %p1089_p13 = por %p1088_p12, %p1087_p11 }
 0x2c1   : > { %p1090_p0 = pnand %p1089_p13, %p1083_p8 }
 0x2c3   : > { %1093 = shalt.err (!%p1090_p0)
}
 0x2c4   : > { %s1138_s28 = smov 128   ;;  %s1139_s16 = smov 8   ;;  %v1063_v49 = vpop.eup %1062  ;;  %v680_v50 = vmul.f32 %v1061_v45, %v1309_v59  ;;  %510 = vst.msk [vmem:[%s1356_s23] sm:$0xf] %vm509_vm8, %v954_v48  ;;  %511 = vst.msk [vmem:[%s1356_s23 + $0x4] sm:$0xf] %vm509_vm8, %v955_v47 }
 0x2c5   : > { %979 = dma.vmem_to_hbm [thread:$0]  (%p1228_p5), %s1349_s14, 256, %s1346_s22, %s1360_s24, %s1138_s28, %s1138_s28, %s1139_s16   ;;  %v1065_v51 = vpop.eup %1064  ;;  %v711_v52 = vmul.f32 %v1063_v49, %v1313_v60  ;;  %vm746_vm9 = vcmask 130048   ;;  %vm749_vm10 = vcmask 195584  }
 0x2c6   : > { %s1435_s26 = smov 64   ;;  %v710_v53 = vmul.f32 %v1065_v51, %v1302_v57  ;;  %s1436_s19 = sshll.u32 %s1442_s25, 3 }
 0x2c7   : > { %732 = vrot.lane.b32.xlu1 %v680_v50, %s1435_s26  ;;  %740 = vrot.lane.b32.xlu0 %v711_v52, %s1435_s26  ;;  %s403_s23 = scalar_lea.vmem %s1429_s9, %s1436_s19 }
 0x2cb   : > { %738 = vrot.lane.b32.xlu1 %v710_v53, %s1435_s26 }
 0x313   : > { %v715_v54 = vpop.permute.xlu1 %714 }
 0x317   : > { %v723_v55 = vpop.permute.xlu1 %722 }
 0x318   : > { %v744_v62 = vsel %vm608_vm7, %v715_v54, %v723_v55 }
 0x31b   : > { %v731_v56 = vpop.permute.xlu1 %730 }
 0x31c   : > { %v747_v57 = vsel %vm746_vm9, %v744_v62, %v731_v56 }
 0x31f   : > { %v717_v58 = vpop.permute.xlu1 %716 }
 0x323   : > { %v725_v59 = vpop.permute.xlu1 %724 }
 0x324   : > { %v745_v60 = vsel %vm608_vm7, %v717_v58, %v725_v59 }
 0x339   : > { %v733_v61 = vpop.permute.xlu1 %732  ;;  %v741_v63 = vpop.permute.xlu0 %740 }
 0x33a   : > { %v748_v0 = vsel %vm746_vm9, %v745_v60, %v733_v61 }
 0x33b   : > { %v751_v3 = vsel %vm749_vm10, %v748_v0, %v741_v63 }
 0x33c   : > { %753 = vst.msk [vmem:[%s403_s23 + $0x8] sm:$0xff] %vm440_vm1, %v751_v3 }
 0x33d   : > { %v739_v1 = vpop.permute.xlu1 %738 }
 0x33e   : > { %v750_v2 = vsel %vm749_vm10, %v747_v57, %v739_v1 }
 0x33f   : > { %752 = vst.msk [vmem:[%s403_s23] sm:$0xff] %vm440_vm1, %v750_v2 }
 0x340 PF: > { %p985_p5 = scmp.ge.s32.totalorder %s1128_s12, 2  ;;  %s809_s24 = sand.u32 1, %s1116_s30  }
 0x341   : > { %s810_s25 = scalar_lea.sflag [#allocation3], %s809_s24 }
 0x342   : > { %p982_p1 = pnand %p985_p5, %p1232_p6 }
 0x344   : > { %1111 = dma.done.wait (!%p982_p1), %s810_s25, 256  }
 0x345   : > { %1113 = vsyncadd (!%p982_p1), %s810_s25, 4294967040  ;;  %p20_p2 = scmp.ge.s32.totalorder %s1215_s15, 6   ;;  %s1437_s30 = smov %s1120_s10 }
 0x346   : > { %s1438_s10 = smov %s1124_s11  ;;  %s1439_s11 = smov %s1226_s18 }
 0x347   : > { %s1440_s12 = smov %s1215_s15  ;;  %22 = sbr.rel (!%p20_p2) target bundleno = 3 (0x3), region = 113 }
 0x34e   :  { %823 = vsyncpa [#allocation3], 1 }
 0x34f   :  { %825 = vsyncpa [#allocation3 + $0x1], 1 }

</bundles_post_ra>
